<compile_context>
chip_gen: v7x
topology: tpu7x:2x2x1
jax: 0.10.0
libtpu: 0.0.40
codegen_flags: <defaults>
</compile_context>

<pallas_src>
import jax
import jax.numpy as jnp
from jax.experimental import pallas as pl
from jax.experimental.pallas import tpu as pltpu

_LANES = 128
_MAX_TILE_ROWS = 4096  # 4096*128*4B = 2 MiB per f32 input block


def _round_up(a, b):
    return (a + b - 1) // b * b


def _dice_kernel(x_ref, t_ref, o_ref, inter_acc, x_acc, t_acc):
    """Blocks: x/t (1, tile_rows, 128); out (1, 1, 128); acc (8, 128) f32."""
    k = pl.program_id(1)

    @pl.when(k == 0)
    def _():
        inter_acc[...] = jnp.zeros_like(inter_acc)
        x_acc[...] = jnp.zeros_like(x_acc)
        t_acc[...] = jnp.zeros_like(t_acc)

    x = x_ref[0].astype(jnp.float32)  # (tile_rows, 128)
    t = t_ref[0].astype(jnp.float32)

    # Regroup rows as (-1, 8, 128): summing over axis 0 is pure elementwise
    # vreg adds (VALU), keeping the XLU out of the per-step hot loop.
    g = x.shape[0] // 8
    inter_acc[...] += jnp.sum((x * t).reshape(g, 8, _LANES), axis=0)
    x_acc[...] += jnp.sum(x.reshape(g, 8, _LANES), axis=0)
    t_acc[...] += jnp.sum(t.reshape(g, 8, _LANES), axis=0)

    @pl.when(k == pl.num_programs(1) - 1)
    def _():
        smooth = jnp.float32(1.0)
        inter = jnp.sum(inter_acc[...])
        xs = jnp.sum(x_acc[...])
        ts = jnp.sum(t_acc[...])
        dice = (2.0 * inter + smooth) / (xs + ts + smooth)
        # Lane-dense per-sample output; wrapper reads [:, 0, 0].
        o_ref[...] = jnp.full(o_ref.shape, dice, dtype=jnp.float32)


@jax.jit
def dice_loss(inputs, targets):
    """DiceLoss.forward: 1 - mean_n[(2*sum(x*t)+1)/(sum(x)+sum(t)+1)]."""
    N = targets.shape[0]
    D = 1
    for s in targets.shape[1:]:
        D *= int(s)

    x = inputs.reshape(N, D)
    t = targets.reshape(N, D)

    # --- static tile selection (shapes are static under jit) -------------
    rows = -(-D // _LANES)                       # ceil(D / 128)
    k_steps = max(1, -(-rows // _MAX_TILE_ROWS))  # number of feature tiles
    tile_rows = _round_up(-(-rows // k_steps), 8)  # balanced, sublane-aligned
    rows_padded = tile_rows * k_steps
    d_padded = rows_padded * _LANES

    if d_padded != D:
        pad = d_padded - D
        x = jnp.pad(x, ((0, 0), (0, pad)))
        t = jnp.pad(t, ((0, 0), (0, pad)))

    x = x.reshape(N, rows_padded, _LANES)
    t = t.reshape(N, rows_padded, _LANES)

    bytes_accessed = (
        N * d_padded * (jnp.dtype(x.dtype).itemsize + jnp.dtype(t.dtype).itemsize)
        + N * _LANES * 4
    )
    cost = pl.CostEstimate(
        flops=4 * N * d_padded, transcendentals=0, bytes_accessed=bytes_accessed
    )

    dice = pl.pallas_call(
        _dice_kernel,
        out_shape=jax.ShapeDtypeStruct((N, 1, _LANES), jnp.float32),
        grid_spec=pltpu.PrefetchScalarGridSpec(
            num_scalar_prefetch=0,
            grid=(N, k_steps),
            in_specs=[
                pl.BlockSpec((1, tile_rows, _LANES), lambda i, k: (i, k, 0)),
                pl.BlockSpec((1, tile_rows, _LANES), lambda i, k: (i, k, 0)),
            ],
            out_specs=pl.BlockSpec((1, 1, _LANES), lambda i, k: (i, 0, 0)),
            scratch_shapes=[
                pltpu.VMEM((8, _LANES), jnp.float32),  # intersection partials
                pltpu.VMEM((8, _LANES), jnp.float32),  # input-sum partials
                pltpu.VMEM((8, _LANES), jnp.float32),  # target-sum partials
            ],
        ),
        compiler_params=pltpu.CompilerParams(
            dimension_semantics=("parallel", "arbitrary"),
            vmem_limit_bytes=48 * 1024 * 1024,
        ),
        cost_estimate=cost,
    )(x, t)

    per_sample_dice = dice[:, 0, 0]
    return jnp.float32(1.0) - jnp.sum(per_sample_dice) / jnp.float32(N)


def dice_loss_ref(inputs, targets):
    """Pure-JAX reference mirroring the PyTorch forward."""
    N = targets.shape[0]
    smooth = 1.0
    x = inputs.reshape(N, -1).astype(jnp.float32)
    t = targets.reshape(N, -1).astype(jnp.float32)
    inter = jnp.sum(x * t, axis=1)
    dice = (2.0 * inter + smooth) / (jnp.sum(x, axis=1) + jnp.sum(t, axis=1) + smooth)
    return 1.0 - jnp.sum(dice) / N


if __name__ == "__main__":
    key = jax.random.PRNGKey(0)
    k1, k2 = jax.random.split(key)
    N, C, H, W = 2, 4, 16, 16  # NCHW, like the PyTorch module
    inputs = jax.nn.sigmoid(jax.random.normal(k1, (N, C, H, W), dtype=jnp.float32))
    targets = (jax.random.uniform(k2, (N, C, H, W)) > 0.5).astype(jnp.float32)

    loss = dice_loss(inputs, targets)
    jax.block_until_ready(loss)

    ref = dice_loss_ref(inputs, targets)
    assert jnp.allclose(loss, ref, atol=1e-5, rtol=1e-5), (loss, ref)
    print("KERNEL_OK")
</pallas_src>

<mosaic_0001>
module attributes {stable_mosaic.version = 11 : i64} {
  func.func @_dice_kernel(%arg0: i32, %arg1: i32, %arg2: memref<1x8x128xf32, #tpu.memory_space<vmem>>, %arg3: memref<1x8x128xf32, #tpu.memory_space<vmem>>, %arg4: memref<1x1x128xf32, #tpu.memory_space<vmem>>, %arg5: memref<8x128xf32, #tpu.memory_space<vmem>>, %arg6: memref<8x128xf32, #tpu.memory_space<vmem>>, %arg7: memref<8x128xf32, #tpu.memory_space<vmem>>) attributes {dimension_semantics = [#tpu.dimension_semantics<parallel>, #tpu.dimension_semantics<arbitrary>], iteration_bounds = array<i64: 2, 1>, scalar_prefetch = 0 : i64, scratch_operands = 3 : i64, tpu.core_type = #tpu.core_type<tc>, window_params = [{transform_indices = @transform_0, window_bounds = array<i64: 1, 8, 128>}, {transform_indices = @transform_1, window_bounds = array<i64: 1, 8, 128>}, {transform_indices = @transform_2, window_bounds = array<i64: 1, 1, 128>}]} {
    %c0_i32 = arith.constant 0 : i32
    %0 = arith.cmpi eq, %arg1, %c0_i32 : i32
    %1 = arith.extui %0 : i1 to i32
    %c0_i32_0 = arith.constant 0 : i32
    %2 = arith.cmpi ne, %1, %c0_i32_0 : i32
    scf.if %2 {
      %cst_22 = arith.constant 0.000000e+00 : f32
      %26 = vector.broadcast %cst_22 : f32 to vector<8x128xf32>
      %c0_23 = arith.constant 0 : index
      %c0_24 = arith.constant 0 : index
      %27 = vector.load %arg5[%c0_23, %c0_24] : memref<8x128xf32, #tpu.memory_space<vmem>>, vector<8x128xf32>
      tpu.vector_store %arg5[%c0_23, %c0_24], %26 {strides = array<i32>} : memref<8x128xf32, #tpu.memory_space<vmem>>, vector<8x128xf32>,
      %cst_25 = arith.constant 0.000000e+00 : f32
      %28 = vector.broadcast %cst_25 : f32 to vector<8x128xf32>
      %c0_26 = arith.constant 0 : index
      %c0_27 = arith.constant 0 : index
      %29 = vector.load %arg6[%c0_26, %c0_27] : memref<8x128xf32, #tpu.memory_space<vmem>>, vector<8x128xf32>
      tpu.vector_store %arg6[%c0_26, %c0_27], %28 {strides = array<i32>} : memref<8x128xf32, #tpu.memory_space<vmem>>, vector<8x128xf32>,
      %cst_28 = arith.constant 0.000000e+00 : f32
      %30 = vector.broadcast %cst_28 : f32 to vector<8x128xf32>
      %c0_29 = arith.constant 0 : index
      %c0_30 = arith.constant 0 : index
      %31 = vector.load %arg7[%c0_29, %c0_30] : memref<8x128xf32, #tpu.memory_space<vmem>>, vector<8x128xf32>
      tpu.vector_store %arg7[%c0_29, %c0_30], %30 {strides = array<i32>} : memref<8x128xf32, #tpu.memory_space<vmem>>, vector<8x128xf32>,
    } else {
    }
    %c0 = arith.constant 0 : index
    %c0_1 = arith.constant 0 : index
    %c0_2 = arith.constant 0 : index
    %3 = vector.load %arg2[%c0, %c0_1, %c0_2] : memref<1x8x128xf32, #tpu.memory_space<vmem>>, vector<1x8x128xf32>
    %4 = vector.shape_cast %3 : vector<1x8x128xf32> to vector<8x128xf32>
    %c0_3 = arith.constant 0 : index
    %c0_4 = arith.constant 0 : index
    %c0_5 = arith.constant 0 : index
    %5 = vector.load %arg3[%c0_3, %c0_4, %c0_5] : memref<1x8x128xf32, #tpu.memory_space<vmem>>, vector<1x8x128xf32>
    %6 = vector.shape_cast %5 : vector<1x8x128xf32> to vector<8x128xf32>
    %c0_6 = arith.constant 0 : index
    %c0_7 = arith.constant 0 : index
    %7 = vector.load %arg5[%c0_6, %c0_7] : memref<8x128xf32, #tpu.memory_space<vmem>>, vector<8x128xf32>
    %8 = arith.mulf %4, %6 : vector<8x128xf32>
    %9 = vector.shape_cast %8 : vector<8x128xf32> to vector<1x8x128xf32>
    %cst = arith.constant dense<0.000000e+00> : vector<8x128xf32>
    %10 = vector.multi_reduction <add>, %9, %cst [0] : vector<1x8x128xf32> to vector<8x128xf32>
    %11 = arith.addf %7, %10 : vector<8x128xf32>
    %c0_8 = arith.constant 0 : index
    %c0_9 = arith.constant 0 : index
    %12 = vector.load %arg5[%c0_8, %c0_9] : memref<8x128xf32, #tpu.memory_space<vmem>>, vector<8x128xf32>
    tpu.vector_store %arg5[%c0_8, %c0_9], %11 {strides = array<i32>} : memref<8x128xf32, #tpu.memory_space<vmem>>, vector<8x128xf32>,
    %c0_10 = arith.constant 0 : index
    %c0_11 = arith.constant 0 : index
    %13 = vector.load %arg6[%c0_10, %c0_11] : memref<8x128xf32, #tpu.memory_space<vmem>>, vector<8x128xf32>
    %14 = vector.shape_cast %4 : vector<8x128xf32> to vector<1x8x128xf32>
    %cst_12 = arith.constant dense<0.000000e+00> : vector<8x128xf32>
    %15 = vector.multi_reduction <add>, %14, %cst_12 [0] : vector<1x8x128xf32> to vector<8x128xf32>
    %16 = arith.addf %13, %15 : vector<8x128xf32>
    %c0_13 = arith.constant 0 : index
    %c0_14 = arith.constant 0 : index
    %17 = vector.load %arg6[%c0_13, %c0_14] : memref<8x128xf32, #tpu.memory_space<vmem>>, vector<8x128xf32>
    tpu.vector_store %arg6[%c0_13, %c0_14], %16 {strides = array<i32>} : memref<8x128xf32, #tpu.memory_space<vmem>>, vector<8x128xf32>,
    %c0_15 = arith.constant 0 : index
    %c0_16 = arith.constant 0 : index
    %18 = vector.load %arg7[%c0_15, %c0_16] : memref<8x128xf32, #tpu.memory_space<vmem>>, vector<8x128xf32>
    %19 = vector.shape_cast %6 : vector<8x128xf32> to vector<1x8x128xf32>
    %cst_17 = arith.constant dense<0.000000e+00> : vector<8x128xf32>
    %20 = vector.multi_reduction <add>, %19, %cst_17 [0] : vector<1x8x128xf32> to vector<8x128xf32>
    %21 = arith.addf %18, %20 : vector<8x128xf32>
    %c0_18 = arith.constant 0 : index
    %c0_19 = arith.constant 0 : index
    %22 = vector.load %arg7[%c0_18, %c0_19] : memref<8x128xf32, #tpu.memory_space<vmem>>, vector<8x128xf32>
    tpu.vector_store %arg7[%c0_18, %c0_19], %21 {strides = array<i32>} : memref<8x128xf32, #tpu.memory_space<vmem>>, vector<8x128xf32>,
    %c0_i32_20 = arith.constant 0 : i32
    %23 = arith.cmpi eq, %arg1, %c0_i32_20 : i32
    %24 = arith.extui %23 : i1 to i32
    %c0_i32_21 = arith.constant 0 : i32
    %25 = arith.cmpi ne, %24, %c0_i32_21 : i32
    scf.if %25 {
      %c0_22 = arith.constant 0 : index
      %c0_23 = arith.constant 0 : index
      %26 = vector.load %arg5[%c0_22, %c0_23] : memref<8x128xf32, #tpu.memory_space<vmem>>, vector<8x128xf32>
      %27 = vector.shape_cast %26 : vector<8x128xf32> to vector<1x8x128xf32>
      %cst_24 = arith.constant dense<0.000000e+00> : vector<1xf32>
      %28 = vector.multi_reduction <add>, %27, %cst_24 [1, 2] : vector<1x8x128xf32> to vector<1xf32>
      %29 = vector.shape_cast %28 : vector<1xf32> to vector<1x1x1xf32>
      %30 = vector.extract %29[0, 0, 0] : f32 from vector<1x1x1xf32>
      %c0_25 = arith.constant 0 : index
      %c0_26 = arith.constant 0 : index
      %31 = vector.load %arg6[%c0_25, %c0_26] : memref<8x128xf32, #tpu.memory_space<vmem>>, vector<8x128xf32>
      %32 = vector.shape_cast %31 : vector<8x128xf32> to vector<1x8x128xf32>
      %cst_27 = arith.constant dense<0.000000e+00> : vector<1xf32>
      %33 = vector.multi_reduction <add>, %32, %cst_27 [1, 2] : vector<1x8x128xf32> to vector<1xf32>
      %34 = vector.shape_cast %33 : vector<1xf32> to vector<1x1x1xf32>
      %35 = vector.extract %34[0, 0, 0] : f32 from vector<1x1x1xf32>
      %c0_28 = arith.constant 0 : index
      %c0_29 = arith.constant 0 : index
      %36 = vector.load %arg7[%c0_28, %c0_29] : memref<8x128xf32, #tpu.memory_space<vmem>>, vector<8x128xf32>
      %37 = vector.shape_cast %36 : vector<8x128xf32> to vector<1x8x128xf32>
      %cst_30 = arith.constant dense<0.000000e+00> : vector<1xf32>
      %38 = vector.multi_reduction <add>, %37, %cst_30 [1, 2] : vector<1x8x128xf32> to vector<1xf32>
      %39 = vector.shape_cast %38 : vector<1xf32> to vector<1x1x1xf32>
      %40 = vector.extract %39[0, 0, 0] : f32 from vector<1x1x1xf32>
      %cst_31 = arith.constant 2.000000e+00 : f32
      %41 = arith.mulf %cst_31, %30 : f32
      %cst_32 = arith.constant 1.000000e+00 : f32
      %42 = arith.addf %41, %cst_32 : f32
      %43 = arith.addf %35, %40 : f32
      %cst_33 = arith.constant 1.000000e+00 : f32
      %44 = arith.addf %43, %cst_33 : f32
      %45 = arith.divf %42, %44 : f32
      %46 = vector.broadcast %45 : f32 to vector<1x1x128xf32>
      %c0_34 = arith.constant 0 : index
      %c0_35 = arith.constant 0 : index
      %c0_36 = arith.constant 0 : index
      %47 = vector.load %arg4[%c0_34, %c0_35, %c0_36] : memref<1x1x128xf32, #tpu.memory_space<vmem>>, vector<1x1x128xf32>
      tpu.vector_store %arg4[%c0_34, %c0_35, %c0_36], %46 {strides = array<i32>} : memref<1x1x128xf32, #tpu.memory_space<vmem>>, vector<1x1x128xf32>,
    } else {
    }
    return
  }
  func.func @transform_0(%arg0: i32, %arg1: i32) -> (i32, i32, i32) {
    %c0_i32 = arith.constant 0 : i32
    %c0_i32_0 = arith.constant 0 : i32
    return %arg0, %arg1, %c0_i32 : i32, i32, i32
  }
  func.func @transform_1(%arg0: i32, %arg1: i32) -> (i32, i32, i32) {
    %c0_i32 = arith.constant 0 : i32
    %c0_i32_0 = arith.constant 0 : i32
    return %arg0, %arg1, %c0_i32 : i32, i32, i32
  }
  func.func @transform_2(%arg0: i32, %arg1: i32) -> (i32, i32, i32) {
    %c0_i32 = arith.constant 0 : i32
    %c0_i32_0 = arith.constant 0 : i32
    %c0_i32_1 = arith.constant 0 : i32
    return %arg0, %c0_i32, %c0_i32_0 : i32, i32, i32
  }
}

</mosaic_0001>

<bundles_post_ra>
// kernel: dice_loss.1
= control target key start
LH: loop header
LB: loop body
LE: loop exit
PB: predicated region body
PF: predicated region fallthrough
CT: control target
= control target key end

     0   :  { %s408_s9 = smov 0   ;;  %s410_s10 = smov 0   ;;  %s448_s0 = inlined_call_operand.vmem [shape: f32[2,8,128], index: 0, kind: input, shape index: {}]   ;;  %s449_s1 = inlined_call_operand.vmem [shape: f32[2,8,128], index: 1, kind: input, shape index: {}]   ;;  %s450_s2 = inlined_call_operand.vmem [shape: f32[2,1,128], index: 2, kind: output, shape index: {}]  }
   0x1   :  { %s412_s11 = smov 0  }
   0x2 LB: > { %s24_s12 = sadd.s32 1, %s387_s10  ;;  %p330_p0 = scmp.ge.s32.totalorder %s391_s11, 1  ;;  %s391_s11 = sphi %s412_s11, %s12_s11   ;;  %s387_s10 = sphi %s410_s10, %s452_s10   ;;  %s383_s9 = sphi %s408_s9, %s451_s9  }
   0x3   : > { %p26_p1 = scmp.ge.s32.totalorder %s24_s12, 2  ;;  %p142_p2 = scmp.lt.s32.totalorder %s391_s11, 3 }
   0x5   : > { %s454_s12 = smov (%p26_p1, %s24_s12), 0  ;;  %p143_p3 = pnand %p330_p0, %p142_p2 }
   0x6   : > { %p171_p4 = scmp.lt.s32.totalorder (!%p143_p3), %s383_s9, 1 }
   0x7   : > { %146 = sbr.rel (%p143_p3) target bundleno = 300 (0x12c), region = 28 }
   0xe   : > { %s456_s9 = smov (!%p171_p4, %s383_s9), 1 }
   0xf   : > { %s331_s13 = sshll.u32 %s456_s9, 3  ;;  %s187_s30 = scalar_lea.vmem %s450_s2, %s456_s9 }
  0x10   : > { %s184_s16 = scalar_lea.vmem %s449_s1, %s331_s13  ;;  %s177_s19 = scalar_lea.vmem %s448_s0, %s331_s13 }
  0x11   : > { %v196_v0 = vld [vmem:[%s184_s16] sm:$0xff] }
  0x12   : > { %v195_v1 = vld [vmem:[%s177_s19] sm:$0xff]  ;;  %234 = vadd.xlane.f32.xlu1 %v196_v0 }
  0x13   : > { %v198_v2 = vmul.f32 %v196_v0, %v195_v1 }
  0x15   : > { %214 = vadd.xlane.f32.xlu0 %v198_v2 }
  0x19   : > { %224 = vadd.xlane.f32.xlu0 %v195_v1 }
  0x9f   : > { %v235_v3 = vpop.xlane.xlu1 %234 }
  0xa0   : > { %v236_v4 = vrot.slane %v235_v3, 4 }
  0xa2   : > { %v215_v5 = vpop.xlane.xlu0 %214  ;;  %v237_v6 = vadd.f32 %v236_v4, %v235_v3 }
  0xa3   : > { %v216_v7 = vrot.slane %v215_v5, 4 }
  0xa4   : > { %v238_v9 = vrot.slane %v237_v6, 2 }
  0xa5   : > { %v217_v8 = vadd.f32 %v216_v7, %v215_v5 }
  0xa6   : > { %v225_v10 = vpop.xlane.xlu0 %224  ;;  %v239_v15 = vadd.f32 %v238_v9, %v237_v6 }
  0xa7   : > { %v218_v11 = vrot.slane %v217_v8, 2  ;;  %v226_v12 = vrot.slane %v225_v10, 4 }
  0xa8   : > { %v240_v20 = vrot.slane %v239_v15, 1 }
  0xa9   : > { %v227_v13 = vadd.f32 %v226_v12, %v225_v10  ;;  %v219_v14 = vadd.f32 %v218_v11, %v217_v8 }
  0xaa   : > { %v241_v23 = vadd.f32 %v240_v20, %v239_v15 }
  0xab   : > { %v228_v16 = vrot.slane %v227_v13, 2  ;;  %v220_v17 = vrot.slane %v219_v14, 1 }
  0xad   : > { %v229_v18 = vadd.f32 %v228_v16, %v227_v13  ;;  %v221_v19 = vadd.f32 %v220_v17, %v219_v14 }
  0xaf   : > { %335 = vpush %v221_v19  ;;  %v230_v21 = vrot.slane %v229_v18, 1 }
  0xb1   : > { %v231_v22 = vadd.f32 %v230_v21, %v229_v18 }
  0xb3   : > { %337 = vpush %v231_v22 }
  0xb4   : > { %339 = vpush %v241_v23 }
  0xe0   : > { %s336_s20 = spop %335 }
  0xe1   : > { %s243_s25 = smul.f32 2.0, %s336_s20 }
  0xe3   : > { %s244_s26 = sadd.f32 1.0, %s243_s25 }
  0xe4   : > { %s338_s21 = spop %337 }
  0xe5   : > { %s340_s22 = spop %339 }
  0xe6   : > { %s245_s23 = sadd.f32 %s340_s22, %s338_s21 }
  0xe8   : > { %s246_s24 = sadd.f32 1.0, %s245_s23 }
  0xea   : > { %v247_v24 = vstv %s246_s24 }
  0xeb   : > { %367 = vrcp.f32 %v247_v24 }
  0xf5   : > { %v368_v25 = vpop.eup %367 }
  0xf6   : > { %341 = vpush %v368_v25 }
 0x127   : > { %s342_s27 = spop %341 }
 0x128   : > { %s250_s3 = smul.f32 %s342_s27, %s244_s26 }
 0x12a   : > { %v251_v26 = vstv %s250_s3 }
 0x12b   : > { %252 = vst [vmem:[%s187_s30] sm:$0x1] %v251_v26 }
 0x12c PF: > { %s12_s11 = sadd.s32 1, %s391_s11   ;;  %s451_s9 = smov %s387_s10 }
 0x12d   : > { %p9_p5 = scmp.ge.s32.totalorder %s12_s11, 4   ;;  %s452_s10 = smov %s454_s12 }
 0x12f   :  { %11 = sbr.rel (!%p9_p5) target bundleno = 2 (0x2), region = 69 }

</bundles_post_ra>
